<compile_context>
chip_gen: v5e
topology: v5e:2x2
jax: 0.10.0
libtpu: 0.0.40
codegen_flags: <defaults>
</compile_context>

<pallas_src>
import functools

import jax
import jax.numpy as jnp
from jax import lax
from jax.experimental import pallas as pl
from jax.experimental.pallas import tpu as pltpu


def _ce_acc_partial_kernel(pred_ref, tgt_ref, out_ref, *, n_total):
    i = pl.program_id(0)

    x = pred_ref[...].astype(jnp.float32)        # (TILE_N, C) logits
    t = tgt_ref[...]                             # (TILE_N, 1) int32 class ids
    tn, c = x.shape

    # Valid-row mask: rows of the last tile that fall past N are padding.
    row = lax.broadcasted_iota(jnp.int32, (tn, 1), 0) + i * tn
    valid = row < n_total                                                   # (TILE_N, 1)

    # --- cross entropy: log-softmax gathered at the target index ---
    xmax = jnp.max(x, axis=-1, keepdims=True)                               # (TILE_N, 1)
    lse = xmax + jnp.log(jnp.sum(jnp.exp(x - xmax), axis=-1, keepdims=True))
    col = lax.broadcasted_iota(jnp.int32, (tn, c), 1)                       # (TILE_N, C)
    onehot = col == t
    picked = jnp.sum(jnp.where(onehot, x, 0.0), axis=-1, keepdims=True)     # (TILE_N, 1)
    nll = jnp.where(valid, lse - picked, 0.0)                               # masked

    # --- accuracy: first-index argmax (matches torch.argmax tie-breaking) ---
    pred_cls = jnp.min(jnp.where(x == xmax, col, jnp.int32(c)),
                       axis=-1, keepdims=True)                              # (TILE_N, 1)
    correct = jnp.where(valid & (pred_cls == t), 1.0, 0.0)

    nll_sum = jnp.sum(nll)
    cor_sum = jnp.sum(correct)

    # Lane-dense (1, 128) partial output: lane 0 = nll sum, lane 1 = correct count.
    lane = lax.broadcasted_iota(jnp.int32, (1, 128), 1)
    out_ref[...] = jnp.where(lane == 0, nll_sum,
                             jnp.where(lane == 1, cor_sum, 0.0))


def multiclass_classification_loss(pred, targets, *, tile_rows=None):
    """pred: (N, C) float logits; targets: (N,) or (N, 1) integer class ids.

    Returns (loss, accuracy) scalars, matching
    MulticlassClassificationLoss(reduction=None, weight=None).forward.
    """
    pred = jnp.asarray(pred)
    if not jnp.issubdtype(pred.dtype, jnp.floating):
        pred = pred.astype(jnp.float32)          # keep bf16/f32 native; cast ints
    n, c = pred.shape

    # targets.squeeze().long()
    tgt = jnp.asarray(targets).reshape(-1).astype(jnp.int32).reshape(n, 1)

    itemsize = pred.dtype.itemsize
    c_pad = ((c + 127) // 128) * 128             # lane padding seen by VMEM
    row_align = 8 * (4 // itemsize)              # 8 (f32) / 16 (bf16) sublane packing

    if tile_rows is None:
        # ~2 MiB pred block in VMEM including lane padding.
        tile_rows = max(row_align, (2 * 1024 * 1024) // (c_pad * itemsize))
    if n <= tile_rows:
        tile_n = n                               # full-dim block: no alignment needed
    else:
        tile_n = max(row_align, (tile_rows // row_align) * row_align)
    num_tiles = -(-n // tile_n)

    # VMEM budget: 2x double-buffered (pred block + padded tgt block + out block).
    block_bytes = (tile_n * c_pad * itemsize) + (tile_n * 128 * 4) + (128 * 4)
    vmem_limit = min(32 * 1024 * 1024, max(16 * 1024 * 1024, 4 * block_bytes))

    cost = pl.CostEstimate(
        flops=6 * n * c,
        transcendentals=n * c,
        bytes_accessed=n * c * itemsize + n * 4 + num_tiles * 128 * 4,
    )

    partials = pl.pallas_call(
        functools.partial(_ce_acc_partial_kernel, n_total=n),
        out_shape=jax.ShapeDtypeStruct((num_tiles, 128), jnp.float32),
        grid=(num_tiles,),
        in_specs=[
            pl.BlockSpec((tile_n, c), lambda i: (i, 0)),
            pl.BlockSpec((tile_n, 1), lambda i: (i, 0)),
        ],
        out_specs=pl.BlockSpec((1, 128), lambda i: (i, 0)),
        compiler_params=pltpu.CompilerParams(
            dimension_semantics=("parallel",),
            vmem_limit_bytes=vmem_limit,
        ),
        cost_estimate=cost,
    )(pred, tgt)

    inv_n = 1.0 / jnp.float32(n)
    loss = jnp.sum(partials[:, 0]) * inv_n
    acc = 100.0 * jnp.sum(partials[:, 1]) * inv_n
    return loss, acc


def _reference(pred, targets):
    # Pure-JAX reference for sanity checking.
    pred = jnp.asarray(pred, jnp.float32)
    t = jnp.asarray(targets).reshape(-1).astype(jnp.int32)
    logp = jax.nn.log_softmax(pred, axis=-1)
    nll = -jnp.take_along_axis(logp, t[:, None], axis=-1)[:, 0]
    loss = jnp.mean(nll)
    acc = 100.0 * jnp.sum(jnp.argmax(pred, axis=-1) == t) / t.shape[0]
    return loss, acc


if __name__ == "__main__":
    key = jax.random.PRNGKey(0)

    # Test 1: small single-tile case (N=8, C=10), targets given as (N, 1).
    k1, k2, k3, k4 = jax.random.split(key, 4)
    N, C = 8, 10
    pred = jax.random.normal(k1, (N, C), dtype=jnp.float32)
    targets = jax.random.randint(k2, (N, 1), 0, C)  # squeezed inside

    loss, acc = multiclass_classification_loss(pred, targets)
    jax.block_until_ready((loss, acc))
    ref_loss, ref_acc = _reference(pred, targets)
    assert jnp.allclose(loss, ref_loss, atol=1e-5, rtol=1e-5), (loss, ref_loss)
    assert jnp.allclose(acc, ref_acc, atol=1e-5, rtol=1e-5), (acc, ref_acc)

    # Test 2: multi-tile case with a ragged last tile (exercises grid + masking).
    N2, C2 = 40, 10
    pred2 = jax.random.normal(k3, (N2, C2), dtype=jnp.float32)
    targets2 = jax.random.randint(k4, (N2,), 0, C2)

    loss2, acc2 = multiclass_classification_loss(pred2, targets2, tile_rows=16)
    jax.block_until_ready((loss2, acc2))
    ref_loss2, ref_acc2 = _reference(pred2, targets2)
    assert jnp.allclose(loss2, ref_loss2, atol=1e-5, rtol=1e-5), (loss2, ref_loss2)
    assert jnp.allclose(acc2, ref_acc2, atol=1e-5, rtol=1e-5), (acc2, ref_acc2)

    print("KERNEL_OK")
</pallas_src>

<mosaic_0001>
module attributes {stable_mosaic.version = 11 : i64} {
  func.func @_ce_acc_partial_kernel(%arg0: i32, %arg1: memref<8x10xf32, #tpu.memory_space<vmem>>, %arg2: memref<8x1xi32, #tpu.memory_space<vmem>>, %arg3: memref<1x128xf32, #tpu.memory_space<vmem>>) attributes {dimension_semantics = [#tpu.dimension_semantics<parallel>], iteration_bounds = array<i64: 1>, scalar_prefetch = 0 : i64, scratch_operands = 0 : i64, tpu.core_type = #tpu.core_type<tc>, window_params = [{transform_indices = @transform_0, window_bounds = array<i64: 8, 10>}, {transform_indices = @transform_1, window_bounds = array<i64: 8, 1>}, {transform_indices = @transform_2, window_bounds = array<i64: 1, 128>}]} {
    %c0 = arith.constant 0 : index
    %c0_0 = arith.constant 0 : index
    %0 = vector.load %arg1[%c0, %c0_0] : memref<8x10xf32, #tpu.memory_space<vmem>>, vector<8x10xf32>
    %c0_1 = arith.constant 0 : index
    %c0_2 = arith.constant 0 : index
    %1 = vector.load %arg2[%c0_1, %c0_2] : memref<8x1xi32, #tpu.memory_space<vmem>>, vector<8x1xi32>
    %2 = tpu.iota {dimensions = array<i32: 0>} : vector<8x1xi32>
    %c8_i32 = arith.constant 8 : i32
    %3 = arith.muli %arg0, %c8_i32 : i32
    %4 = vector.broadcast %3 : i32 to vector<8x1xi32>
    %5 = arith.addi %2, %4 : vector<8x1xi32>
    %c8_i32_3 = arith.constant 8 : i32
    %6 = vector.broadcast %c8_i32_3 : i32 to vector<8x1xi32>
    %7 = arith.cmpi slt, %5, %6 : vector<8x1xi32>
    %cst = arith.constant dense<0xFF800000> : vector<8xf32>
    %8 = vector.multi_reduction <maximumf>, %0, %cst [1] : vector<8x10xf32> to vector<8xf32>
    %9 = vector.shape_cast %8 : vector<8xf32> to vector<8x1xf32>
    %10 = vector.broadcast %9 : vector<8x1xf32> to vector<8x10xf32>
    %11 = arith.subf %0, %10 : vector<8x10xf32>
    %12 = math.exp %11 : vector<8x10xf32>
    %cst_4 = arith.constant dense<0.000000e+00> : vector<8xf32>
    %13 = vector.multi_reduction <add>, %12, %cst_4 [1] : vector<8x10xf32> to vector<8xf32>
    %14 = vector.shape_cast %13 : vector<8xf32> to vector<8x1xf32>
    %15 = math.log %14 : vector<8x1xf32>
    %16 = arith.addf %9, %15 : vector<8x1xf32>
    %17 = tpu.iota {dimensions = array<i32: 1>} : vector<8x10xi32>
    %18 = vector.broadcast %1 : vector<8x1xi32> to vector<8x10xi32>
    %19 = arith.cmpi eq, %17, %18 : vector<8x10xi32>
    %cst_5 = arith.constant 0.000000e+00 : f32
    %20 = vector.broadcast %cst_5 : f32 to vector<8x10xf32>
    %21 = arith.select %19, %0, %20 : vector<8x10xi1>, vector<8x10xf32>
    %cst_6 = arith.constant dense<0.000000e+00> : vector<8xf32>
    %22 = vector.multi_reduction <add>, %21, %cst_6 [1] : vector<8x10xf32> to vector<8xf32>
    %23 = vector.shape_cast %22 : vector<8xf32> to vector<8x1xf32>
    %24 = arith.subf %16, %23 : vector<8x1xf32>
    %cst_7 = arith.constant 0.000000e+00 : f32
    %25 = vector.broadcast %cst_7 : f32 to vector<8x1xf32>
    %26 = arith.select %7, %24, %25 : vector<8x1xi1>, vector<8x1xf32>
    %27 = vector.broadcast %9 : vector<8x1xf32> to vector<8x10xf32>
    %28 = arith.cmpf oeq, %0, %27 : vector<8x10xf32>
    %c10_i32 = arith.constant 10 : i32
    %29 = vector.broadcast %c10_i32 : i32 to vector<8x10xi32>
    %30 = arith.select %28, %17, %29 : vector<8x10xi1>, vector<8x10xi32>
    %cst_8 = arith.constant dense<2147483647> : vector<8xi32>
    %31 = vector.multi_reduction <minsi>, %30, %cst_8 [1] : vector<8x10xi32> to vector<8xi32>
    %32 = vector.shape_cast %31 : vector<8xi32> to vector<8x1xi32>
    %33 = arith.cmpi eq, %32, %1 : vector<8x1xi32>
    %34 = arith.andi %7, %33 : vector<8x1xi1>
    %cst_9 = arith.constant 1.000000e+00 : f32
    %cst_10 = arith.constant 0.000000e+00 : f32
    %35 = vector.broadcast %cst_9 : f32 to vector<8x1xf32>
    %36 = vector.broadcast %cst_10 : f32 to vector<8x1xf32>
    %37 = arith.select %34, %35, %36 : vector<8x1xi1>, vector<8x1xf32>
    %38 = vector.shape_cast %26 : vector<8x1xf32> to vector<1x8x1xf32>
    %cst_11 = arith.constant dense<0.000000e+00> : vector<1xf32>
    %39 = vector.multi_reduction <add>, %38, %cst_11 [1, 2] : vector<1x8x1xf32> to vector<1xf32>
    %40 = vector.shape_cast %39 : vector<1xf32> to vector<1x1x1xf32>
    %41 = vector.extract %40[0, 0, 0] : f32 from vector<1x1x1xf32>
    %42 = vector.shape_cast %37 : vector<8x1xf32> to vector<1x8x1xf32>
    %cst_12 = arith.constant dense<0.000000e+00> : vector<1xf32>
    %43 = vector.multi_reduction <add>, %42, %cst_12 [1, 2] : vector<1x8x1xf32> to vector<1xf32>
    %44 = vector.shape_cast %43 : vector<1xf32> to vector<1x1x1xf32>
    %45 = vector.extract %44[0, 0, 0] : f32 from vector<1x1x1xf32>
    %46 = tpu.iota {dimensions = array<i32: 1>} : vector<1x128xi32>
    %c0_i32 = arith.constant 0 : i32
    %47 = vector.broadcast %c0_i32 : i32 to vector<1x128xi32>
    %48 = arith.cmpi eq, %46, %47 : vector<1x128xi32>
    %c1_i32 = arith.constant 1 : i32
    %49 = vector.broadcast %c1_i32 : i32 to vector<1x128xi32>
    %50 = arith.cmpi eq, %46, %49 : vector<1x128xi32>
    %cst_13 = arith.constant 0.000000e+00 : f32
    %51 = vector.broadcast %45 : f32 to vector<1x128xf32>
    %52 = vector.broadcast %cst_13 : f32 to vector<1x128xf32>
    %53 = arith.select %50, %51, %52 : vector<1x128xi1>, vector<1x128xf32>
    %54 = vector.broadcast %41 : f32 to vector<1x128xf32>
    %55 = arith.select %48, %54, %53 : vector<1x128xi1>, vector<1x128xf32>
    %c0_14 = arith.constant 0 : index
    %c0_15 = arith.constant 0 : index
    %56 = vector.load %arg3[%c0_14, %c0_15] : memref<1x128xf32, #tpu.memory_space<vmem>>, vector<1x128xf32>
    tpu.vector_store %arg3[%c0_14, %c0_15], %55 {strides = array<i32>} : memref<1x128xf32, #tpu.memory_space<vmem>>, vector<1x128xf32>,
    return
  }
  func.func @transform_0(%arg0: i32) -> (i32, i32) {
    %c0_i32 = arith.constant 0 : i32
    %c0_i32_0 = arith.constant 0 : i32
    return %arg0, %c0_i32 : i32, i32
  }
  func.func @transform_1(%arg0: i32) -> (i32, i32) {
    %c0_i32 = arith.constant 0 : i32
    %c0_i32_0 = arith.constant 0 : i32
    return %arg0, %c0_i32 : i32, i32
  }
  func.func @transform_2(%arg0: i32) -> (i32, i32) {
    %c0_i32 = arith.constant 0 : i32
    %c0_i32_0 = arith.constant 0 : i32
    return %arg0, %c0_i32 : i32, i32
  }
}

</mosaic_0001>

<bundles_post_ra>
// kernel: tpu_custom_call.1
= control target key start
LH: loop header
LB: loop body
LE: loop exit
PB: predicated region body
PF: predicated region fallthrough
CT: control target
= control target key end

     0   :  { %vm20_vm0 = vcmask 80896   ;;  %s185_s0 = inlined_call_operand.vmem [shape: f32[8,10], index: 0, kind: input, shape index: {}]   ;;  %s186_s1 = inlined_call_operand.vmem [shape: s32[8,1], index: 1, kind: input, shape index: {}]   ;;  %s187_s2 = inlined_call_operand.hbm [shape: f32[1,128], index: 2, kind: output, shape index: {}]  }
   0x1   :  { %v12_v0 = vld [vmem:[%s185_s0] sm:$0xff] }
   0x2   :  { %v13_v1 = vld [vmem:[%s186_s1] sm:$0xff] }
   0x3   :  { %7 = vsyncpa [#allocation3], 0  ;;  %v21_v2 = vsel %vm20_vm0, %v12_v0, -inf  ;;  %v148_v3 = vmov 0   ;;  %v33_v4 = vlaneseq  ;;  %vm65_vm4 = vcmask 7168   ;;  %s150_s0 = smov [#allocation2]  }
   0x4   :  { %116 = vset.pattern.permute.xlu1 %v148_v3  ;;  %117 = vset.pattern.permute.xlu0 %v148_v3  ;;  %v149_v30 = vmov 0.0   ;;  %s98_s1 = sshll.u32 %s150_s0, 4  ;;  %s100_s16 = sshll.u32 %s187_s2, 4  ;;  %s99_s1 = int_to_ptr.vmem [resolvable:$true] %s98_s1  ;;  %s101_s16 = int_to_ptr.hbm [resolvable:$true] %s100_s16 }
   0x5   :  { %22 = vmax.xlane.f32.xlu0 %v21_v2  ;;  %36 = vperm.xlu1 %116, %v13_v1   ;;  %v173_v5 = vand.u32 127, %v33_v4 }
   0x7   :  { %vm87_vm6 = vcmp.eq.s32.totalorder %v173_v5, 1  ;;  %vm86_vm7 = vcmp.eq.s32.totalorder %v173_v5, 0 }
  0x77   :  { %v37_v18 = vpop.permute.xlu1 %36 }
  0x78   :  { %v23_v6 = vpop.xlane.xlu0 %22  ;;  %vm38_vm3 = vcmp.eq.s32.totalorder %v173_v5, %v37_v18 }
  0x79   :  { %v24_v7 = vsub.f32 %v12_v0, %v23_v6  ;;  %vm45_vm1 = vcmp.eq.f32.partialorder %v12_v0, %v23_v6  ;;  %v39_v20 = vsel %vm38_vm3, %v12_v0, 0.0 }
  0x7a   :  { %v46_v8 = vsel %vm45_vm1, %v173_v5, 10  ;;  %v40_v21 = vsel %vm20_vm0, %v39_v20, 0.0 }
  0x7b   :  { %v25_v9 = vmul.f32 1.442695, %v24_v7  ;;  %v47_v10 = vsel %vm20_vm0, %v46_v8, 2147483647 }
  0x7c   :  { %v49_v11 = vshra.s32 %v47_v10, 16  ;;  %v48_v15 = vand.u32 65535, %v47_v10 }
  0x7d   :  { %118 = vpow2.f32 %v25_v9 }
  0x7e   :  { %v51_v12 = vcvt.s32.f32 %v49_v11  ;;  %v50_v17 = vcvt.s32.f32 %v48_v15 }
  0x80   :  { %52 = vmin.xlane.f32.xlu0 %v51_v12 }
  0x83   :  { %v119_v13 = vpop.eup %118 }
  0x84   :  { %v27_v14 = vsel %vm20_vm0, %v119_v13, 0.0 }
  0x85   :  { %28 = vadd.xlane.f32.xlu1 %v27_v14 }
  0xf3   :  { %v53_v16 = vpop.xlane.xlu0 %52 }
  0xf4   :  { %vm54_vm2 = vcmp.eq.f32.partialorder %v51_v12, %v53_v16  ;;  %v59_v23 = vcvt.f32.s32 %v53_v16 }
  0xf5   :  { %v55_v19 = vsel %vm54_vm2, %v50_v17, inf }
  0xf6   :  { %56 = vmin.xlane.f32.xlu2 %v55_v19  ;;  %v60_v26 = vshll.u32 %v59_v23, 16 }
  0xf8   :  { %v29_v22 = vpop.xlane.xlu1 %28 }
  0xf9   :  { %120 = vlog2.f32 %v29_v22 }
  0xfe   :  { %41 = vadd.xlane.f32.xlu2 %v40_v21 }
  0xff   :  { %v121_v24 = vpop.eup %120 }
 0x100   :  { %v31_v28 = vmul.f32 0.6931472, %v121_v24 }
 0x102   :  { %v32_v33 = vadd.f32 %v31_v28, %v23_v6 }
 0x169   :  { %v57_v25 = vpop.xlane.xlu2 %56 }
 0x16a   :  { %v58_v27 = vcvt.f32.s32 %v57_v25 }
 0x16c   :  { %v61_v29 = vadd.s32 %v60_v26, %v58_v27 }
 0x16e   :  { %vm62_vm5 = vcmp.eq.s32.totalorder %v61_v29, %v13_v1 }
 0x16f   :  { %v64_v31 = vsel %vm62_vm5, 1.0, %v149_v30 }
 0x170   :  { %v76_v32 = vsel %vm65_vm4, %v64_v31, 0.0 }
 0x171   :  { %77 = vadd.xlane.f32.xlu2 %v76_v32  ;;  %v42_v34 = vpop.xlane.xlu2 %41 }
 0x172   :  { %v43_v35 = vsub.f32 %v32_v33, %v42_v34 }
 0x174   :  { %v66_v36 = vsel %vm65_vm4, %v43_v35, 0.0 }
 0x175   :  { %67 = vadd.xlane.f32.xlu0 %v66_v36 }
 0x1e4   :  { %v78_v37 = vpop.xlane.xlu2 %77 }
 0x1e5   :  { %v79_v38 = vrot.slane %v78_v37, 4 }
 0x1e7   :  { %v80_v39 = vadd.f32 %v79_v38, %v78_v37 }
 0x1e8   :  { %v68_v40 = vpop.xlane.xlu0 %67 }
 0x1e9   :  { %v81_v41 = vrot.slane %v80_v39, 2  ;;  %v69_v42 = vrot.slane %v68_v40, 4 }
 0x1eb   :  { %v70_v43 = vadd.f32 %v69_v42, %v68_v40  ;;  %v82_v44 = vadd.f32 %v81_v41, %v80_v39 }
 0x1ed   :  { %v71_v45 = vrot.slane %v70_v43, 2  ;;  %v83_v47 = vrot.slane %v82_v44, 1 }
 0x1ef   :  { %v72_v46 = vadd.f32 %v71_v45, %v70_v43  ;;  %v84_v50 = vadd.f32 %v83_v47, %v82_v44 }
 0x1f1   :  { %v73_v48 = vrot.slane %v72_v46, 1 }
 0x1f3   :  { %v74_v49 = vadd.f32 %v73_v48, %v72_v46 }
 0x1f5   :  { %109 = vpush %v74_v49 }
 0x1f6   :  { %111 = vpush %v84_v50 }
 0x226   :  { %s110_s13 = spop %109 }
 0x227   :  { %v90_v51 = vstv %s110_s13  ;;  %s112_s17 = spop %111 }
 0x228   :  { %v88_v52 = vstv %s112_s17 }
 0x229   :  { %v89_v53 = vsel %vm87_vm6, %v88_v52, 0.0 }
 0x22a   :  { %v91_v54 = vsel %vm86_vm7, %v90_v51, %v89_v53 }
 0x22b   :  { %92 = vst [vmem:[#allocation2] sm:$0x1] %v91_v54 }
 0x22c   :  { %103 = dma.vmem_to_hbm [thread:$0]  %s99_s1, 16, %s101_s16, [#allocation3]  }
 0x22d   :  { %146 = dma.done.wait [#allocation3], 16  }
 0x22e   :  { %147 = vsyncadd [#allocation3], 4294967280 }
 0x22f   :  { %108 = vsyncpa [#allocation3], 1 }

</bundles_post_ra>
